<compile_context>
chip_gen: v5e
topology: v5e:2x2
jax: 0.10.0
libtpu: 0.0.40
codegen_flags: <defaults>
</compile_context>

<pallas_src>
import jax
import jax.numpy as jnp
from jax.experimental import pallas as pl
from jax.experimental.pallas import tpu as pltpu

_SUBLANE = 8
_LANE = 128
_TARGET_BLOCK_ELEMS = 512 * 1024  # ~2 MiB of f32 per grid step


def _round_down(v, m):
    return (v // m) * m


def _pixel_normalize_kernel(mean_ref, inv_std_ref, x_ref, o_ref):
    # mean_ref / inv_std_ref: (blk_r, 1) f32 VMEM (broadcast over lanes).
    # x_ref / o_ref:          (blk_r, blk_l) VMEM tiles.
    x = x_ref[...].astype(jnp.float32)
    o_ref[...] = ((x - mean_ref[...]) * inv_std_ref[...]).astype(o_ref.dtype)


def pixel_normalize(x, mean, std):
    """x: (N, C, H, W); mean/std: (C,) float32. Returns (x - mean) / std in x.dtype
    (compute is f32; matches the PyTorch module for f32 inputs)."""
    N, C, H, W = x.shape
    NC, HW = N * C, H * W

    # Lane-dense view: one row per (n, c) plane.  For contiguous inputs this
    # reshape is a no-copy relayout.
    x2 = x.reshape(NC, HW)

    # Precompute reciprocal once; expand per-channel params to per-row (NC, 1).
    mean_f = jnp.asarray(mean, dtype=jnp.float32)
    inv_std_f = 1.0 / jnp.asarray(std, dtype=jnp.float32)
    mean_rows = jnp.tile(mean_f, N).reshape(NC, 1)
    inv_rows = jnp.tile(inv_std_f, N).reshape(NC, 1)

    # Lane (last-dim) block: multiple of 128 sized toward the target, or the
    # full extent when HW < 128 (BlockSpec rule: divisible by 128 or full dim).
    if HW < _LANE:
        blk_l = HW
    else:
        blk_l = max(
            _LANE,
            _round_down(min(HW, _TARGET_BLOCK_ELEMS // _SUBLANE), _LANE),
        )

    # Sublane (row) block: multiple of 8, or the full extent when NC < 8;
    # sized so blk_r * blk_l stays near the target block size.
    if NC < _SUBLANE:
        blk_r = NC
    else:
        blk_r = max(
            _SUBLANE,
            _round_down(
                min(NC, max(_SUBLANE, _TARGET_BLOCK_ELEMS // blk_l)), _SUBLANE
            ),
        )

    # Rows outer, lanes inner: output writeback walks the lane axis densely.
    grid = (pl.cdiv(NC, blk_r), pl.cdiv(HW, blk_l))

    out2 = pl.pallas_call(
        _pixel_normalize_kernel,
        out_shape=jax.ShapeDtypeStruct((NC, HW), x.dtype),
        grid=grid,
        in_specs=[
            pl.BlockSpec((blk_r, 1), lambda i, j: (i, 0)),       # mean rows
            pl.BlockSpec((blk_r, 1), lambda i, j: (i, 0)),       # 1/std rows
            pl.BlockSpec((blk_r, blk_l), lambda i, j: (i, j)),   # x
        ],
        out_specs=pl.BlockSpec((blk_r, blk_l), lambda i, j: (i, j)),
        compiler_params=pltpu.CompilerParams(
            dimension_semantics=("parallel", "parallel"),
        ),
    )(mean_rows, inv_rows, x2)

    return out2.reshape(N, C, H, W)


if __name__ == "__main__":
    # Deterministic parameters (same defaults as the PyTorch module).
    mean = jnp.array([0.485, 0.456, 0.406], dtype=jnp.float32)
    std = jnp.array([0.229, 0.224, 0.225], dtype=jnp.float32)

    key = jax.random.PRNGKey(0)

    # Test 1: small aligned f32 input (batch=2, channels=3 RGB, 16x16).
    k0, k1, k2 = jax.random.split(key, 3)
    x = jax.random.uniform(k0, (2, 3, 16, 16), dtype=jnp.float32)
    out = jax.block_until_ready(pixel_normalize(x, mean, std))
    ref = (x - mean[None, :, None, None]) / std[None, :, None, None]
    assert out.shape == x.shape and out.dtype == x.dtype
    assert jnp.allclose(out, ref, atol=1e-6, rtol=1e-6)

    # Test 2: non-(8,128)-aligned spatial extent exercises the masked
    # remainder-store path (NC=6 < 8, HW=420 not a multiple of 128).
    x_odd = jax.random.uniform(k1, (2, 3, 20, 21), dtype=jnp.float32)
    out_odd = jax.block_until_ready(pixel_normalize(x_odd, mean, std))
    ref_odd = (x_odd - mean[None, :, None, None]) / std[None, :, None, None]
    assert jnp.allclose(out_odd, ref_odd, atol=1e-6, rtol=1e-6)

    # Test 3: bf16 input exercises the in-kernel upcast / downcast path.
    x_bf = jax.random.uniform(k2, (2, 3, 16, 16), dtype=jnp.float32).astype(
        jnp.bfloat16
    )
    out_bf = jax.block_until_ready(pixel_normalize(x_bf, mean, std))
    ref_bf = (
        (x_bf.astype(jnp.float32) - mean[None, :, None, None])
        / std[None, :, None, None]
    ).astype(jnp.bfloat16)
    assert out_bf.dtype == jnp.bfloat16
    assert jnp.allclose(
        out_bf.astype(jnp.float32), ref_bf.astype(jnp.float32), atol=3e-2, rtol=3e-2
    )

    print("KERNEL_OK")
</pallas_src>

<mosaic_0001>
module attributes {stable_mosaic.version = 11 : i64} {
  func.func @_pixel_normalize_kernel(%arg0: i32, %arg1: i32, %arg2: memref<6x1xf32, #tpu.memory_space<vmem>>, %arg3: memref<6x1xf32, #tpu.memory_space<vmem>>, %arg4: memref<6x256xf32, #tpu.memory_space<vmem>>, %arg5: memref<6x256xf32, #tpu.memory_space<vmem>>) attributes {dimension_semantics = [#tpu.dimension_semantics<parallel>, #tpu.dimension_semantics<parallel>], iteration_bounds = array<i64: 1, 1>, scalar_prefetch = 0 : i64, scratch_operands = 0 : i64, tpu.core_type = #tpu.core_type<tc>, window_params = [{transform_indices = @transform_0, window_bounds = array<i64: 6, 1>}, {transform_indices = @transform_1, window_bounds = array<i64: 6, 1>}, {transform_indices = @transform_2, window_bounds = array<i64: 6, 256>}, {transform_indices = @transform_3, window_bounds = array<i64: 6, 256>}]} {
    %c0 = arith.constant 0 : index
    %c0_0 = arith.constant 0 : index
    %0 = vector.load %arg4[%c0, %c0_0] : memref<6x256xf32, #tpu.memory_space<vmem>>, vector<6x256xf32>
    %c0_1 = arith.constant 0 : index
    %c0_2 = arith.constant 0 : index
    %1 = vector.load %arg2[%c0_1, %c0_2] : memref<6x1xf32, #tpu.memory_space<vmem>>, vector<6x1xf32>
    %2 = vector.broadcast %1 : vector<6x1xf32> to vector<6x256xf32>
    %3 = arith.subf %0, %2 : vector<6x256xf32>
    %c0_3 = arith.constant 0 : index
    %c0_4 = arith.constant 0 : index
    %4 = vector.load %arg3[%c0_3, %c0_4] : memref<6x1xf32, #tpu.memory_space<vmem>>, vector<6x1xf32>
    %5 = vector.broadcast %4 : vector<6x1xf32> to vector<6x256xf32>
    %6 = arith.mulf %3, %5 : vector<6x256xf32>
    %c0_5 = arith.constant 0 : index
    %c0_6 = arith.constant 0 : index
    %7 = vector.load %arg5[%c0_5, %c0_6] : memref<6x256xf32, #tpu.memory_space<vmem>>, vector<6x256xf32>
    tpu.vector_store %arg5[%c0_5, %c0_6], %6 {strides = array<i32>} : memref<6x256xf32, #tpu.memory_space<vmem>>, vector<6x256xf32>,
    return
  }
  func.func @transform_0(%arg0: i32, %arg1: i32) -> (i32, i32) {
    %c0_i32 = arith.constant 0 : i32
    %c0_i32_0 = arith.constant 0 : i32
    return %arg0, %c0_i32 : i32, i32
  }
  func.func @transform_1(%arg0: i32, %arg1: i32) -> (i32, i32) {
    %c0_i32 = arith.constant 0 : i32
    %c0_i32_0 = arith.constant 0 : i32
    return %arg0, %c0_i32 : i32, i32
  }
  func.func @transform_2(%arg0: i32, %arg1: i32) -> (i32, i32) {
    %c0_i32 = arith.constant 0 : i32
    return %arg0, %arg1 : i32, i32
  }
  func.func @transform_3(%arg0: i32, %arg1: i32) -> (i32, i32) {
    %c0_i32 = arith.constant 0 : i32
    return %arg0, %arg1 : i32, i32
  }
}

</mosaic_0001>

<bundles_post_ra>
// kernel: tpu_custom_call.1
= control target key start
LH: loop header
LB: loop body
LE: loop exit
PB: predicated region body
PF: predicated region fallthrough
CT: control target
= control target key end

     0   :  { %v80_v1 = vmov 0   ;;  %s117_s0 = inlined_call_operand.vmem [shape: f32[6,1], index: 0, kind: input, shape index: {}]   ;;  %s118_s1 = inlined_call_operand.vmem [shape: f32[6,1], index: 1, kind: input, shape index: {}]   ;;  %s119_s2 = inlined_call_operand.vmem [shape: f32[6,256], index: 2, kind: input, shape index: {}]   ;;  %s120_s3 = inlined_call_operand.hbm [shape: f32[6,256], index: 3, kind: output, shape index: {}]  }
   0x1   :  { %v17_v0 = vld [vmem:[%s117_s0] sm:$0x3f]  ;;  %53 = vset.pattern.permute.xlu0 %v80_v1 }
   0x2   :  { %8 = vsyncpa [#allocation3], 0  ;;  %20 = vperm.xlu0 %53, %v17_v0   ;;  %v25_v2 = vld [vmem:[%s118_s1] sm:$0x3f]  ;;  %v16_v5 = vld [vmem:[%s119_s2 + $0x8] sm:$0x3f] }
   0x3   :  { %v15_v4 = vld [vmem:[%s119_s2] sm:$0x3f]  ;;  %s81_s0 = smov [#allocation2]   ;;  %s42_s23 = sshll.u32 %s120_s3, 4  ;;  %s43_s23 = int_to_ptr.hbm [resolvable:$true] %s42_s23 }
   0x4   :  { %s40_s20 = sshll.u32 %s81_s0, 4  ;;  %s41_s20 = int_to_ptr.vmem [resolvable:$true] %s40_s20 }
   0xa   :  { %28 = vperm.xlu0 %53, %v25_v2  }
  0x74   :  { %v21_v3 = vpop.permute.xlu0 %20 }
  0x75   :  { %v23_v6 = vsub.f32 %v15_v4, %v21_v3  ;;  %v24_v7 = vsub.f32 %v16_v5, %v21_v3 }
  0x7c   :  { %v29_v8 = vpop.permute.xlu0 %28 }
  0x7d   :  { %v31_v9 = vmul.f32 %v29_v8, %v23_v6  ;;  %v32_v10 = vmul.f32 %v29_v8, %v24_v7 }
  0x7f   :  { %33 = vst [vmem:[#allocation2] sm:$0x3f] %v31_v9 }
  0x80   :  { %34 = vst [vmem:[#allocation2 + $0x8] sm:$0x3f] %v32_v10 }
  0x81   :  { %45 = dma.vmem_to_hbm [thread:$0]  %s41_s20, 256, %s43_s23, [#allocation3]  }
  0x82   :  { %78 = dma.done.wait [#allocation3], 256  }
  0x83   :  { %79 = vsyncadd [#allocation3], 4294967040 }
  0x84   :  { %50 = vsyncpa [#allocation3], 1 }

</bundles_post_ra>
